<compile_context>
chip_gen: v5e
topology: v5e:2x2
jax: 0.10.0
libtpu: 0.0.40
codegen_flags: <defaults>
</compile_context>

<pallas_src>
import functools

import jax
import jax.numpy as jnp
from jax.experimental import pallas as pl
from jax.experimental.pallas import tpu as pltpu


def _channel_attn_kernel(x_ref, w1t_ref, w2_ref, o_ref, sum_ref, max_ref, *,
                         inv_hw):
    # x_ref   block: (1, C, hw_chunk)  lane axis = flattened spatial chunk
    # w1t_ref block: (C, Cr)           first 1x1-conv weight, transposed
    # w2_ref  block: (C, Cr)           second 1x1-conv weight (PyTorch layout)
    # o_ref   block: (1, C, 1)
    # sum_ref / max_ref scratch: (C, 1) running accumulators across the k axis
    k = pl.program_id(1)

    @pl.when(k == 0)
    def _init():
        sum_ref[...] = jnp.zeros_like(sum_ref)
        max_ref[...] = jnp.full_like(max_ref, -jnp.inf)

    xb = x_ref[0]                                            # (C, hw_chunk)
    sum_ref[...] += jnp.sum(xb, axis=-1, keepdims=True)      # lane reduce
    max_ref[...] = jnp.maximum(max_ref[...],
                               jnp.max(xb, axis=-1, keepdims=True))

    @pl.when(k == pl.num_programs(1) - 1)
    def _finalize():
        avg = sum_ref[...] * inv_hw                          # (C, 1)
        mx = max_ref[...]                                    # (C, 1)
        w1t = w1t_ref[...]                                   # (C, Cr)
        w2 = w2_ref[...]                                     # (C, Cr)
        # h = relu(W1 @ v): contract channel axis (sublane reduce), exact f32.
        h_avg = jnp.maximum(jnp.sum(w1t * avg, axis=0, keepdims=True), 0.0)
        h_max = jnp.maximum(jnp.sum(w1t * mx, axis=0, keepdims=True), 0.0)
        h = h_avg + h_max                                    # (1, Cr)
        out = jnp.sum(w2 * h, axis=1, keepdims=True)         # (C, 1)
        o_ref[0] = jax.nn.sigmoid(out).astype(o_ref.dtype)


def channel_attention(x, w1, w2):
    """x: (N, C, H, W) f32; w1: (Cr, C); w2: (C, Cr)  ->  (N, C, 1, 1).

    w1 / w2 are the PyTorch Conv2d weights (Cr, C, 1, 1) / (C, Cr, 1, 1)
    with the trailing 1x1 dims squeezed.
    """
    N, C, H, W = x.shape
    Cr = w1.shape[0]
    assert w1.shape == (Cr, C) and w2.shape == (C, Cr)
    HW = H * W

    # Free, contiguous reshape: no extra HBM pass, lane axis = spatial dim.
    x_flat = x.reshape(N, C, HW)
    w1t = jnp.transpose(w1)                                  # (C, Cr), tiny

    # Lane-dense spatial chunk: multiple of 128 dividing HW, block kept small
    # enough that the double-buffered (C, chunk) tile stays well inside the
    # default scoped VMEM on every chip generation (incl. v7x).
    if HW % 128 == 0:
        max_lanes = max(128, min(2048, (4 << 20) // max(1, 4 * C) // 128 * 128))
        chunk = 128
        while chunk * 2 <= min(HW, max_lanes) and HW % (chunk * 2) == 0:
            chunk *= 2
    else:
        chunk = HW                     # full extent (block dim == array dim)
    nchunks = HW // chunk

    kernel = functools.partial(_channel_attn_kernel, inv_hw=1.0 / HW)

    out = pl.pallas_call(
        kernel,
        out_shape=jax.ShapeDtypeStruct((N, C, 1), x.dtype),
        grid=(N, nchunks),
        in_specs=[
            pl.BlockSpec((1, C, chunk), lambda n, k: (n, 0, k)),
            pl.BlockSpec((C, Cr), lambda n, k: (0, 0)),
            pl.BlockSpec((C, Cr), lambda n, k: (0, 0)),
        ],
        out_specs=pl.BlockSpec((1, C, 1), lambda n, k: (n, 0, 0)),
        scratch_shapes=[
            pltpu.VMEM((C, 1), jnp.float32),   # running sum
            pltpu.VMEM((C, 1), jnp.float32),   # running max
        ],
        compiler_params=pltpu.CompilerParams(
            dimension_semantics=("parallel", "arbitrary")),
    )(x_flat, w1t, w2)

    return out.reshape(N, C, 1, 1)


def _reference(x, w1, w2):
    avg = jnp.mean(x, axis=(2, 3))                           # (N, C)
    mx = jnp.max(x, axis=(2, 3))                             # (N, C)

    def mlp(v):
        h = jnp.maximum(
            jnp.matmul(v, w1.T, precision=jax.lax.Precision.HIGHEST), 0.0)
        return jnp.matmul(h, w2.T, precision=jax.lax.Precision.HIGHEST)

    y = jax.nn.sigmoid(mlp(avg) + mlp(mx))                   # (N, C)
    return y.reshape(y.shape[0], y.shape[1], 1, 1)


if __name__ == "__main__":
    key = jax.random.PRNGKey(0)
    kx, k1, k2 = jax.random.split(key, 3)

    # in_planes must be >= ratio for the PyTorch module; use C=64, ratio=16.
    N, C, H, W = 2, 64, 16, 16
    ratio = 16
    Cr = C // ratio                                          # 4

    x = jax.random.normal(kx, (N, C, H, W), dtype=jnp.float32)
    # Conv2d(C, Cr, 1, bias=False) weight (Cr, C, 1, 1) -> (Cr, C)
    w1 = jax.random.normal(k1, (Cr, C), dtype=jnp.float32) * 0.1
    # Conv2d(Cr, C, 1, bias=False) weight (C, Cr, 1, 1) -> (C, Cr)
    w2 = jax.random.normal(k2, (C, Cr), dtype=jnp.float32) * 0.1

    out = channel_attention(x, w1, w2)
    out = jax.block_until_ready(out)

    ref = _reference(x, w1, w2)
    assert out.shape == (N, C, 1, 1)
    assert jnp.allclose(out, ref, rtol=1e-5, atol=1e-5), "mismatch vs reference"

    print("KERNEL_OK")
</pallas_src>

<mosaic_0001>
module attributes {stable_mosaic.version = 11 : i64} {
  func.func @_channel_attn_kernel(%arg0: i32, %arg1: i32, %arg2: memref<1x64x256xf32, #tpu.memory_space<vmem>>, %arg3: memref<64x4xf32, #tpu.memory_space<vmem>>, %arg4: memref<64x4xf32, #tpu.memory_space<vmem>>, %arg5: memref<1x64x1xf32, #tpu.memory_space<vmem>>, %arg6: memref<64x1xf32, #tpu.memory_space<vmem>>, %arg7: memref<64x1xf32, #tpu.memory_space<vmem>>) attributes {dimension_semantics = [#tpu.dimension_semantics<parallel>, #tpu.dimension_semantics<arbitrary>], iteration_bounds = array<i64: 2, 1>, scalar_prefetch = 0 : i64, scratch_operands = 2 : i64, tpu.core_type = #tpu.core_type<tc>, window_params = [{transform_indices = @transform_0, window_bounds = array<i64: 1, 64, 256>}, {pipeline_mode = #tpu.pipeline_mode<synchronous>, transform_indices = @transform_1, window_bounds = array<i64: 64, 4>}, {pipeline_mode = #tpu.pipeline_mode<synchronous>, transform_indices = @transform_2, window_bounds = array<i64: 64, 4>}, {transform_indices = @transform_3, window_bounds = array<i64: 1, 64, 1>}]} {
    %c0_i32 = arith.constant 0 : i32
    %0 = arith.cmpi eq, %arg1, %c0_i32 : i32
    %1 = arith.extui %0 : i1 to i32
    %c0_i32_0 = arith.constant 0 : i32
    %2 = arith.cmpi ne, %1, %c0_i32_0 : i32
    scf.if %2 {
      %cst_14 = arith.constant 0.000000e+00 : f32
      %18 = vector.broadcast %cst_14 : f32 to vector<64x1xf32>
      %c0_15 = arith.constant 0 : index
      %c0_16 = arith.constant 0 : index
      %19 = vector.load %arg6[%c0_15, %c0_16] : memref<64x1xf32, #tpu.memory_space<vmem>>, vector<64x1xf32>
      tpu.vector_store %arg6[%c0_15, %c0_16], %18 {strides = array<i32>} : memref<64x1xf32, #tpu.memory_space<vmem>>, vector<64x1xf32>,
      %cst_17 = arith.constant 0xFF800000 : f32
      %20 = vector.broadcast %cst_17 : f32 to vector<64x1xf32>
      %c0_18 = arith.constant 0 : index
      %c0_19 = arith.constant 0 : index
      %21 = vector.load %arg7[%c0_18, %c0_19] : memref<64x1xf32, #tpu.memory_space<vmem>>, vector<64x1xf32>
      tpu.vector_store %arg7[%c0_18, %c0_19], %20 {strides = array<i32>} : memref<64x1xf32, #tpu.memory_space<vmem>>, vector<64x1xf32>,
    } else {
    }
    %c0 = arith.constant 0 : index
    %c0_1 = arith.constant 0 : index
    %c0_2 = arith.constant 0 : index
    %3 = vector.load %arg2[%c0, %c0_1, %c0_2] : memref<1x64x256xf32, #tpu.memory_space<vmem>>, vector<1x64x256xf32>
    %4 = vector.shape_cast %3 : vector<1x64x256xf32> to vector<64x256xf32>
    %c0_3 = arith.constant 0 : index
    %c0_4 = arith.constant 0 : index
    %5 = vector.load %arg6[%c0_3, %c0_4] : memref<64x1xf32, #tpu.memory_space<vmem>>, vector<64x1xf32>
    %cst = arith.constant dense<0.000000e+00> : vector<64xf32>
    %6 = vector.multi_reduction <add>, %4, %cst [1] : vector<64x256xf32> to vector<64xf32>
    %7 = vector.shape_cast %6 : vector<64xf32> to vector<64x1xf32>
    %8 = arith.addf %5, %7 : vector<64x1xf32>
    %c0_5 = arith.constant 0 : index
    %c0_6 = arith.constant 0 : index
    %9 = vector.load %arg6[%c0_5, %c0_6] : memref<64x1xf32, #tpu.memory_space<vmem>>, vector<64x1xf32>
    tpu.vector_store %arg6[%c0_5, %c0_6], %8 {strides = array<i32>} : memref<64x1xf32, #tpu.memory_space<vmem>>, vector<64x1xf32>,
    %c0_7 = arith.constant 0 : index
    %c0_8 = arith.constant 0 : index
    %10 = vector.load %arg7[%c0_7, %c0_8] : memref<64x1xf32, #tpu.memory_space<vmem>>, vector<64x1xf32>
    %cst_9 = arith.constant dense<0xFF800000> : vector<64xf32>
    %11 = vector.multi_reduction <maximumf>, %4, %cst_9 [1] : vector<64x256xf32> to vector<64xf32>
    %12 = vector.shape_cast %11 : vector<64xf32> to vector<64x1xf32>
    %13 = arith.maximumf %10, %12 : vector<64x1xf32>
    %c0_10 = arith.constant 0 : index
    %c0_11 = arith.constant 0 : index
    %14 = vector.load %arg7[%c0_10, %c0_11] : memref<64x1xf32, #tpu.memory_space<vmem>>, vector<64x1xf32>
    tpu.vector_store %arg7[%c0_10, %c0_11], %13 {strides = array<i32>} : memref<64x1xf32, #tpu.memory_space<vmem>>, vector<64x1xf32>,
    %c0_i32_12 = arith.constant 0 : i32
    %15 = arith.cmpi eq, %arg1, %c0_i32_12 : i32
    %16 = arith.extui %15 : i1 to i32
    %c0_i32_13 = arith.constant 0 : i32
    %17 = arith.cmpi ne, %16, %c0_i32_13 : i32
    scf.if %17 {
      %c0_14 = arith.constant 0 : index
      %c0_15 = arith.constant 0 : index
      %18 = vector.load %arg6[%c0_14, %c0_15] : memref<64x1xf32, #tpu.memory_space<vmem>>, vector<64x1xf32>
      %cst_16 = arith.constant 3.906250e-03 : f32
      %19 = vector.broadcast %cst_16 : f32 to vector<64x1xf32>
      %20 = arith.mulf %18, %19 : vector<64x1xf32>
      %c0_17 = arith.constant 0 : index
      %c0_18 = arith.constant 0 : index
      %21 = vector.load %arg7[%c0_17, %c0_18] : memref<64x1xf32, #tpu.memory_space<vmem>>, vector<64x1xf32>
      %c0_19 = arith.constant 0 : index
      %c0_20 = arith.constant 0 : index
      %22 = vector.load %arg3[%c0_19, %c0_20] : memref<64x4xf32, #tpu.memory_space<vmem>>, vector<64x4xf32>
      %c0_21 = arith.constant 0 : index
      %c0_22 = arith.constant 0 : index
      %23 = vector.load %arg4[%c0_21, %c0_22] : memref<64x4xf32, #tpu.memory_space<vmem>>, vector<64x4xf32>
      %24 = vector.broadcast %20 : vector<64x1xf32> to vector<64x4xf32>
      %25 = arith.mulf %22, %24 : vector<64x4xf32>
      %cst_23 = arith.constant dense<0.000000e+00> : vector<4xf32>
      %26 = vector.multi_reduction <add>, %25, %cst_23 [0] : vector<64x4xf32> to vector<4xf32>
      %27 = vector.shape_cast %26 : vector<4xf32> to vector<1x4xf32>
      %cst_24 = arith.constant 0.000000e+00 : f32
      %28 = vector.broadcast %cst_24 : f32 to vector<1x4xf32>
      %29 = arith.maximumf %27, %28 : vector<1x4xf32>
      %30 = vector.broadcast %21 : vector<64x1xf32> to vector<64x4xf32>
      %31 = arith.mulf %22, %30 : vector<64x4xf32>
      %cst_25 = arith.constant dense<0.000000e+00> : vector<4xf32>
      %32 = vector.multi_reduction <add>, %31, %cst_25 [0] : vector<64x4xf32> to vector<4xf32>
      %33 = vector.shape_cast %32 : vector<4xf32> to vector<1x4xf32>
      %cst_26 = arith.constant 0.000000e+00 : f32
      %34 = vector.broadcast %cst_26 : f32 to vector<1x4xf32>
      %35 = arith.maximumf %33, %34 : vector<1x4xf32>
      %36 = arith.addf %29, %35 : vector<1x4xf32>
      %37 = vector.broadcast %36 : vector<1x4xf32> to vector<64x4xf32>
      %38 = arith.mulf %23, %37 : vector<64x4xf32>
      %cst_27 = arith.constant dense<0.000000e+00> : vector<64xf32>
      %39 = vector.multi_reduction <add>, %38, %cst_27 [1] : vector<64x4xf32> to vector<64xf32>
      %40 = vector.shape_cast %39 : vector<64xf32> to vector<64x1xf32>
      %41 = arith.negf %40 : vector<64x1xf32>
      %42 = math.exp %41 : vector<64x1xf32>
      %cst_28 = arith.constant 1.000000e+00 : f32
      %43 = vector.broadcast %cst_28 : f32 to vector<64x1xf32>
      %44 = arith.addf %43, %42 : vector<64x1xf32>
      %45 = arith.divf %43, %44 : vector<64x1xf32>
      %c0_29 = arith.constant 0 : index
      %c0_30 = arith.constant 0 : index
      %c0_31 = arith.constant 0 : index
      %46 = vector.load %arg5[%c0_29, %c0_30, %c0_31] : memref<1x64x1xf32, #tpu.memory_space<vmem>>, vector<1x64x1xf32>
      %47 = vector.shape_cast %46 : vector<1x64x1xf32> to vector<64x1xf32>
      %48 = vector.shape_cast %45 : vector<64x1xf32> to vector<1x64x1xf32>
      tpu.vector_store %arg5[%c0_29, %c0_30, %c0_31], %48 {strides = array<i32>} : memref<1x64x1xf32, #tpu.memory_space<vmem>>, vector<1x64x1xf32>,
    } else {
    }
    return
  }
  func.func @transform_0(%arg0: i32, %arg1: i32) -> (i32, i32, i32) {
    %c0_i32 = arith.constant 0 : i32
    %c0_i32_0 = arith.constant 0 : i32
    return %arg0, %c0_i32, %arg1 : i32, i32, i32
  }
  func.func @transform_1(%arg0: i32, %arg1: i32) -> (i32, i32) {
    %c0_i32 = arith.constant 0 : i32
    %c0_i32_0 = arith.constant 0 : i32
    %c0_i32_1 = arith.constant 0 : i32
    return %c0_i32, %c0_i32_0 : i32, i32
  }
  func.func @transform_2(%arg0: i32, %arg1: i32) -> (i32, i32) {
    %c0_i32 = arith.constant 0 : i32
    %c0_i32_0 = arith.constant 0 : i32
    %c0_i32_1 = arith.constant 0 : i32
    return %c0_i32, %c0_i32_0 : i32, i32
  }
  func.func @transform_3(%arg0: i32, %arg1: i32) -> (i32, i32, i32) {
    %c0_i32 = arith.constant 0 : i32
    %c0_i32_0 = arith.constant 0 : i32
    %c0_i32_1 = arith.constant 0 : i32
    return %arg0, %c0_i32, %c0_i32_0 : i32, i32, i32
  }
}

</mosaic_0001>

<bundles_post_ra>
// kernel: tpu_custom_call.1
= control target key start
LH: loop header
LB: loop body
LE: loop exit
PB: predicated region body
PF: predicated region fallthrough
CT: control target
= control target key end

     0   :  { %8 = vsyncpa [#allocation5], 0  ;;  %s1318_s0 = inlined_call_operand.hbm [shape: f32[2,64,256], index: 0, kind: input, shape index: {}]   ;;  %s1319_s1 = inlined_call_operand.vmem [shape: f32[64,4], index: 1, kind: input, shape index: {}]   ;;  %s1320_s2 = inlined_call_operand.vmem [shape: f32[64,4], index: 2, kind: input, shape index: {}]   ;;  %s1321_s3 = inlined_call_operand.vmem [shape: f32[2,64,1], index: 3, kind: output, shape index: {}]  }
   0x1   :  { %10 = vsyncpa [#allocation5 + $0x1], 0  ;;  %s1024_s12 = smov 0   ;;  %s1026_s13 = smov 0  }
   0x2   :  { %s1028_s14 = smov 0   ;;  %s1030_s15 = smov 0  }
   0x3   :  { %s1032_s16 = smov 0   ;;  %s1034_s17 = smov 0  }
   0x4 LB: > { %s799_s18 = sadd.s32 4294967295, %s997_s17   ;;  %s28_s19 = sadd.s32 1, %s993_s16  ;;  %s997_s17 = sphi %s1034_s17, %s16_s17   ;;  %s993_s16 = sphi %s1032_s16, %s1334_s16   ;;  %s989_s15 = sphi %s1030_s15, %s1333_s15   ;;  %s985_s14 = sphi %s1028_s14, %s1332_s14   ;;  %s981_s13 = sphi %s1026_s13, %s1331_s13   ;;  %s977_s12 = sphi %s1024_s12, %s1330_s12  }
   0x5   : > { %p30_p0 = scmp.ge.s32.totalorder %s28_s19, 2  ;;  %s37_s20 = sadd.s32 1, %s985_s14 }
   0x6   : > { %p44_p1 = scmp.ne.s32.totalorder %s985_s14, %s981_s13  ;;  %p45_p2 = scmp.eq.s32.totalorder %s997_s17, 0 }
   0x7   : > { %s1336_s19 = smov (%p30_p0, %s28_s19), 0  ;;  %p50_p4 = scmp.ne.s32.totalorder %s981_s13, %s977_s12 }
   0x8   : > { %p1060_p3 = por %p45_p2, %p44_p1  ;;  %s32_s22 = ssub.s32 %s993_s16, %s1336_s19 }
   0x9   : > { %p51_p5 = scmp.eq.s32.totalorder %s799_s18, 0  ;;  %p35_p6 = scmp.eq.s32.totalorder %s32_s22, 0 }
   0xa   : > { %p828_p8 = scmp.lt.s32.totalorder %s997_s17, 2  ;;  %s148_s25 = sand.u32 1, %s985_s14  }
   0xb   : > { %p1067_p7 = por %p51_p5, %p50_p4  ;;  %s820_s26 = sshll.u32 %s993_s16, 7 }
   0xc   : > { %s1073_s24 = scalar_select %p35_p6, %s985_s14, %s37_s20  }
   0xd   : > { %s803_s27 = sshll.u32 %s148_s25, 7  ;;  %s159_s30 = scalar_lea.hbm %s1318_s0, %s820_s26 }
   0xe   : > { %s160_s4 = sshll.u32 %s159_s30, 4  ;;  %s152_s5 = scalar_lea.vmem [#allocation4], %s803_s27  ;;  %s161_s4 = int_to_ptr.hbm [resolvable:$true] %s160_s4 }
   0xf   : > { %s162_s6 = sshll.u32 %s152_s5, 4  ;;  %p825_p9 = pnand %p828_p8, %p1060_p3  ;;  %s163_s6 = int_to_ptr.vmem [resolvable:$true] %s162_s6 }
  0x10   : > { %p806_p10 = scmp.ge.s32.totalorder %s997_s17, 1  ;;  %p170_p11 = scmp.lt.s32.totalorder %s997_s17, 3 }
  0x11   : > { %s149_s7 = scalar_lea.sflag [#allocation5], %s148_s25  ;;  %s999_s8 = smov 256  }
  0x12   : > { %s1000_s9 = smov 16   ;;  %p171_p12 = pnand %p806_p10, %p170_p11 }
  0x13   : > { %827 = dma.hbm_to_vmem [thread:$0]  (!%p825_p9), %s161_s4, 2048, %s163_s6, %s149_s7, %s999_s8, %s999_s8, %s1000_s9  }
  0x14   : > { %174 = sbr.rel (%p171_p12) target bundleno = 532 (0x214), region = 32  ;;  %s176_s10 = sand.u32 (!%p171_p12), 1, %s981_s13  }
  0x15   : > { %s807_s11 = sshll.u32 (!%p171_p12), %s176_s10, 7  ;;  %s177_s12 = scalar_lea.sflag (!%p171_p12), [#allocation5], %s176_s10 }
  0x16   : > { %s1085_s18 = scalar_lea.vmem (!%p171_p12), [#allocation4], %s807_s11 }
  0x19   : > { %972 = dma.done.wait (%p1067_p7), %s177_s12, 2048  }
  0x1a   : > { %974 = vsyncadd (%p1067_p7), %s177_s12, 4294965248  ;;  %v235_v0 = vld [vmem:[%s1085_s18 + $0x20] sm:$0xff]  ;;  %v236_v1 = vld [vmem:[%s1085_s18 + $0x28] sm:$0xff]  ;;  %vm214_vm0 = vcmask 7168   ;;  %v1001_v16 = vmov 0.0   ;;  %v1002_v33 = vmov -inf  }
  0x1b   : > { %v231_v2 = vld [vmem:[%s1085_s18] sm:$0xff]  ;;  %v261_v3 = vadd.f32 %v236_v1, %v235_v0  ;;  %v232_v4 = vld [vmem:[%s1085_s18 + $0x8] sm:$0xff]  ;;  %v233_v5 = vld [vmem:[%s1085_s18 + $0x10] sm:$0xff]  ;;  %217 = vst.msk [vmem:[#allocation2 + $0x10] sm:$0xff] %vm214_vm0, %v1001_v16  ;;  %v310_v18 = vmax.f32 %v235_v0, %v236_v1  ;;  %v1003_v34 = vmov 0   ;;  %vm435_vm1 = vcmask 31744  }
  0x1c   : > { %v234_v6 = vld [vmem:[%s1085_s18 + $0x18] sm:$0xff]  ;;  %v255_v7 = vadd.f32 %v232_v4, %v231_v2  ;;  %v237_v9 = vld [vmem:[%s1085_s18 + $0x30] sm:$0xff]  ;;  %v304_v11 = vmax.f32 %v231_v2, %v232_v4  ;;  %v239_v14 = vld [vmem:[%s1085_s18 + $0x40] sm:$0xff]  ;;  %215 = vst.msk [vmem:[#allocation2] sm:$0xff] %vm214_vm0, %v1001_v16  ;;  %883 = vset.pattern.permute.xlu2 %v1003_v34  ;;  %882 = vset.pattern.permute.xlu0 %v1003_v34  ;;  %p205_p13 = scmp.lt.s32.totalorder %s989_s15, 1 }
  0x1d   : > { %v307_v8 = vmax.f32 %v233_v5, %v234_v6  ;;  %262 = vadd.xlane.f32.xlu1 %v261_v3  ;;  %v238_v10 = vld [vmem:[%s1085_s18 + $0x38] sm:$0xff]  ;;  %v258_v12 = vadd.f32 %v234_v6, %v233_v5  ;;  %v240_v15 = vld [vmem:[%s1085_s18 + $0x48] sm:$0xff]  ;;  %216 = vst.msk [vmem:[#allocation2 + $0x8] sm:$0xff] %vm214_vm0, %v1001_v16  ;;  %v241_v20 = vld [vmem:[%s1085_s18 + $0x50] sm:$0xff] }
  0x1e   : > { %256 = vadd.xlane.f32.xlu0 %v255_v7  ;;  %v264_v13 = vadd.f32 %v238_v10, %v237_v9  ;;  %v267_v17 = vadd.f32 %v240_v15, %v239_v14  ;;  %v313_v19 = vmax.f32 %v237_v9, %v238_v10  ;;  %218 = vst.msk [vmem:[#allocation2 + $0x18] sm:$0xff] %vm214_vm0, %v1001_v16  ;;  %v242_v21 = vld [vmem:[%s1085_s18 + $0x58] sm:$0xff]  ;;  %v243_v22 = vld [vmem:[%s1085_s18 + $0x60] sm:$0xff]  ;;  %v244_v23 = vld [vmem:[%s1085_s18 + $0x68] sm:$0xff]  ;;  %s1338_s15 = smov (!%p205_p13, %s989_s15), 1 }
  0x1f   : > { %308 = vmax.xlane.f32.xlu2 %v307_v8  ;;  %219 = vst.msk [vmem:[#allocation2 + $0x20] sm:$0xff] %vm214_vm0, %v1001_v16  ;;  %v316_v24 = vmax.f32 %v239_v14, %v240_v15  ;;  %v270_v25 = vadd.f32 %v242_v21, %v241_v20  ;;  %v273_v26 = vadd.f32 %v244_v23, %v243_v22  ;;  %v245_v27 = vld [vmem:[%s1085_s18 + $0x70] sm:$0xff]  ;;  %v246_v28 = vld [vmem:[%s1085_s18 + $0x78] sm:$0xff]  ;;  %s821_s6 = sshll.u32 %s1338_s15, 6 }
  0x20   : > { %220 = vst.msk [vmem:[#allocation2 + $0x28] sm:$0xff] %vm214_vm0, %v1001_v16  ;;  %v276_v29 = vadd.f32 %v246_v28, %v245_v27  ;;  %v319_v30 = vmax.f32 %v241_v20, %v242_v21  ;;  %v322_v31 = vmax.f32 %v243_v22, %v244_v23  ;;  %v325_v32 = vmax.f32 %v245_v27, %v246_v28  ;;  %s1240_s8 = scalar_lea.vmem %s1321_s3, %s821_s6 }
  0x21   : > { %221 = vst.msk [vmem:[#allocation2 + $0x30] sm:$0xff] %vm214_vm0, %v1001_v16  ;;  %884 = vset.pattern.permute.xlu1 %v1003_v34 }
  0x22   : > { %222 = vst.msk [vmem:[#allocation2 + $0x38] sm:$0xff] %vm214_vm0, %v1001_v16  ;;  %v249_v35 = vld [vmem:[#allocation2 + $0x10] sm:$0xff] }
  0x23   : > { %224 = vst.msk [vmem:[#allocation3 + $0x8] sm:$0xff] %vm214_vm0, %v1002_v33  ;;  %v247_v36 = vld [vmem:[#allocation2] sm:$0xff] }
  0x24   : > { %223 = vst.msk [vmem:[#allocation3] sm:$0xff] %vm214_vm0, %v1002_v33  ;;  %v248_v45 = vld [vmem:[#allocation2 + $0x8] sm:$0xff] }
  0x25   : > { %305 = vmax.xlane.f32.xlu1 %v304_v11  ;;  %225 = vst.msk [vmem:[#allocation3 + $0x10] sm:$0xff] %vm214_vm0, %v1002_v33  ;;  %v250_v46 = vld [vmem:[#allocation2 + $0x18] sm:$0xff] }
  0x26   : > { %259 = vadd.xlane.f32.xlu0 %v258_v12  ;;  %226 = vst.msk [vmem:[#allocation3 + $0x18] sm:$0xff] %vm214_vm0, %v1002_v33  ;;  %v251_v54 = vld [vmem:[#allocation2 + $0x20] sm:$0xff] }
  0x27   : > { %265 = vadd.xlane.f32.xlu2 %v264_v13  ;;  %227 = vst.msk [vmem:[#allocation3 + $0x20] sm:$0xff] %vm214_vm0, %v1002_v33  ;;  %v252_v1 = vld [vmem:[#allocation2 + $0x28] sm:$0xff] }
  0x28   : > { %228 = vst.msk [vmem:[#allocation3 + $0x28] sm:$0xff] %vm214_vm0, %v1002_v33  ;;  %v253_v2 = vld [vmem:[#allocation2 + $0x30] sm:$0xff] }
  0x29   : > { %229 = vst.msk [vmem:[#allocation3 + $0x30] sm:$0xff] %vm214_vm0, %v1002_v33  ;;  %v254_v20 = vld [vmem:[#allocation2 + $0x38] sm:$0xff] }
  0x2a   : > { %230 = vst.msk [vmem:[#allocation3 + $0x38] sm:$0xff] %vm214_vm0, %v1002_v33  ;;  %v297_v37 = vld [vmem:[#allocation3 + $0x8] sm:$0xff] }
  0x2b   : > { %v296_v44 = vld [vmem:[#allocation3] sm:$0xff] }
  0x2c   : > { %v298_v55 = vld [vmem:[#allocation3 + $0x10] sm:$0xff] }
  0x2d   : > { %268 = vadd.xlane.f32.xlu1 %v267_v17  ;;  %v299_v56 = vld [vmem:[#allocation3 + $0x18] sm:$0xff] }
  0x2e   : > { %311 = vmax.xlane.f32.xlu0 %v310_v18  ;;  %v300_v0 = vld [vmem:[#allocation3 + $0x20] sm:$0xff] }
  0x2f   : > { %314 = vmax.xlane.f32.xlu2 %v313_v19  ;;  %v301_v10 = vld [vmem:[#allocation3 + $0x28] sm:$0xff] }
  0x30   : > { %v302_v11 = vld [vmem:[#allocation3 + $0x30] sm:$0xff] }
  0x31   : > { %v303_v22 = vld [vmem:[#allocation3 + $0x38] sm:$0xff] }
  0x35   : > { %317 = vmax.xlane.f32.xlu1 %v316_v24 }
  0x36   : > { %271 = vadd.xlane.f32.xlu0 %v270_v25 }
  0x37   : > { %274 = vadd.xlane.f32.xlu2 %v273_v26 }
  0x3d   : > { %277 = vadd.xlane.f32.xlu1 %v276_v29 }
  0x3e   : > { %320 = vmax.xlane.f32.xlu0 %v319_v30 }
  0x3f   : > { %323 = vmax.xlane.f32.xlu2 %v322_v31 }
  0x46   : > { %326 = vmax.xlane.f32.xlu0 %v325_v32 }
  0x90   : > { %v263_v38 = vpop.xlane.xlu1 %262 }
  0x91   : > { %v281_v39 = vadd.f32 %v263_v38, %v249_v35  ;;  %v257_v40 = vpop.xlane.xlu0 %256 }
  0x92   : > { %v309_v41 = vpop.xlane.xlu2 %308  ;;  %v279_v42 = vadd.f32 %v257_v40, %v247_v36 }
  0x93   : > { %v329_v43 = vmax.f32 %v297_v37, %v309_v41  ;;  %290 = vst.msk [vmem:[#allocation2 + $0x10] sm:$0xff] %vm214_vm0, %v281_v39 }
  0x94   : > { %288 = vst.msk [vmem:[#allocation2] sm:$0xff] %vm214_vm0, %v279_v42 }
  0x95   : > { %337 = vst.msk [vmem:[#allocation3 + $0x8] sm:$0xff] %vm214_vm0, %v329_v43 }
  0x98   : > { %v306_v47 = vpop.xlane.xlu1 %305 }
  0x99   : > { %v328_v48 = vmax.f32 %v296_v44, %v306_v47  ;;  %v260_v49 = vpop.xlane.xlu0 %259 }
  0x9a   : > { %v266_v50 = vpop.xlane.xlu2 %265  ;;  %v280_v51 = vadd.f32 %v260_v49, %v248_v45  ;;  %v349_v34 = vld [vmem:[#allocation2 + $0x10] sm:$0xff]  ;;  %v372_v49 = vld [vmem:[%s1319_s1 + $0x8] sm:$0xff] }
  0x9b   : > { %v282_v52 = vadd.f32 %v266_v50, %v250_v46  ;;  %336 = vst.msk [vmem:[#allocation3] sm:$0xff] %vm214_vm0, %v328_v48  ;;  %v347_v30 = vld [vmem:[#allocation2] sm:$0xff]  ;;  %v357_v36 = vmul.f32 0.00390625, %v349_v34 }
  0x9c   : > { %289 = vst.msk [vmem:[#allocation2 + $0x8] sm:$0xff] %vm214_vm0, %v280_v51  ;;  %v364_v53 = vld [vmem:[#allocation3 + $0x8] sm:$0xff]  ;;  %v355_v33 = vmul.f32 0.00390625, %v347_v30  ;;  %v371_v50 = vld [vmem:[%s1319_s1] sm:$0xff] }
  0x9d   : > { %291 = vst.msk [vmem:[#allocation2 + $0x18] sm:$0xff] %vm214_vm0, %v282_v52  ;;  %465 = vperm.xlu2 %883, %v364_v53  }
  0xa0   : > { %v269_v57 = vpop.xlane.xlu1 %268 }
  0xa1   : > { %v283_v58 = vadd.f32 %v269_v57, %v251_v54  ;;  %v312_v59 = vpop.xlane.xlu0 %311  ;;  %v373_v54 = vld [vmem:[%s1319_s1 + $0x10] sm:$0xff] }
  0xa2   : > { %v315_v60 = vpop.xlane.xlu2 %314  ;;  %v330_v61 = vmax.f32 %v298_v55, %v312_v59  ;;  %v363_v62 = vld [vmem:[#allocation3] sm:$0xff] }
  0xa3   : > { %v331_v63 = vmax.f32 %v299_v56, %v315_v60  ;;  %292 = vst.msk [vmem:[#allocation2 + $0x20] sm:$0xff] %vm214_vm0, %v283_v58  ;;  %460 = vperm.xlu0 %882, %v363_v62   ;;  %v348_v24 = vld [vmem:[#allocation2 + $0x8] sm:$0xff]  ;;  %v374_v58 = vld [vmem:[%s1319_s1 + $0x18] sm:$0xff] }
  0xa4   : > { %338 = vst.msk [vmem:[#allocation3 + $0x10] sm:$0xff] %vm214_vm0, %v330_v61  ;;  %v356_v27 = vmul.f32 0.00390625, %v348_v24  ;;  %v350_v37 = vld [vmem:[#allocation2 + $0x18] sm:$0xff] }
  0xa5   : > { %339 = vst.msk [vmem:[#allocation3 + $0x18] sm:$0xff] %vm214_vm0, %v331_v63  ;;  %v358_v38 = vmul.f32 0.00390625, %v350_v37  ;;  %v375_v63 = vld [vmem:[%s1319_s1 + $0x20] sm:$0xff] }
  0xa8   : > { %v318_v3 = vpop.xlane.xlu1 %317 }
  0xa9   : > { %v332_v4 = vmax.f32 %v300_v0, %v318_v3  ;;  %v272_v5 = vpop.xlane.xlu0 %271 }
  0xaa   : > { %v275_v6 = vpop.xlane.xlu2 %274  ;;  %v284_v7 = vadd.f32 %v272_v5, %v252_v1  ;;  %v351_v39 = vld [vmem:[#allocation2 + $0x20] sm:$0xff] }
  0xab   : > { %v285_v8 = vadd.f32 %v275_v6, %v253_v2  ;;  %340 = vst.msk [vmem:[#allocation3 + $0x20] sm:$0xff] %vm214_vm0, %v332_v4  ;;  %v365_v9 = vld [vmem:[#allocation3 + $0x10] sm:$0xff]  ;;  %v359_v40 = vmul.f32 0.00390625, %v351_v39  ;;  %v376_v4 = vld [vmem:[%s1319_s1 + $0x28] sm:$0xff] }
  0xac   : > { %293 = vst.msk [vmem:[#allocation2 + $0x28] sm:$0xff] %vm214_vm0, %v284_v7  ;;  %470 = vperm.xlu2 %883, %v365_v9   ;;  %v366_v13 = vld [vmem:[#allocation3 + $0x18] sm:$0xff] }
  0xad   : > { %294 = vst.msk [vmem:[#allocation2 + $0x30] sm:$0xff] %vm214_vm0, %v285_v8 }
  0xb0   : > { %v278_v19 = vpop.xlane.xlu1 %277 }
  0xb1   : > { %v321_v12 = vpop.xlane.xlu0 %320  ;;  %v286_v21 = vadd.f32 %v278_v19, %v254_v20 }
  0xb2   : > { %v324_v14 = vpop.xlane.xlu2 %323  ;;  %v333_v15 = vmax.f32 %v301_v10, %v321_v12  ;;  %v367_v16 = vld [vmem:[#allocation3 + $0x20] sm:$0xff]  ;;  %v377_v10 = vld [vmem:[%s1319_s1 + $0x30] sm:$0xff]  ;;  %v378_v12 = vld [vmem:[%s1319_s1 + $0x38] sm:$0xff] }
  0xb3   : > { %v334_v17 = vmax.f32 %v302_v11, %v324_v14  ;;  %480 = vperm.xlu0 %882, %v367_v16   ;;  %295 = vst.msk [vmem:[#allocation2 + $0x38] sm:$0xff] %vm214_vm0, %v286_v21  ;;  %v352_v29 = vld [vmem:[#allocation2 + $0x28] sm:$0xff] }
  0xb4   : > { %341 = vst.msk [vmem:[#allocation3 + $0x28] sm:$0xff] %vm214_vm0, %v333_v15  ;;  %475 = vperm.xlu2 %883, %v366_v13   ;;  %v353_v18 = vld [vmem:[#allocation2 + $0x30] sm:$0xff]  ;;  %v360_v31 = vmul.f32 0.00390625, %v352_v29 }
  0xb5   : > { %342 = vst.msk [vmem:[#allocation3 + $0x30] sm:$0xff] %vm214_vm0, %v334_v17  ;;  %v361_v23 = vmul.f32 0.00390625, %v353_v18 }
  0xb9   : > { %v327_v25 = vpop.xlane.xlu0 %326 }
  0xba   : > { %v335_v26 = vmax.f32 %v303_v22, %v327_v25  ;;  %v354_v41 = vld [vmem:[#allocation2 + $0x38] sm:$0xff] }
  0xbb   : > { %v368_v28 = vld [vmem:[#allocation3 + $0x28] sm:$0xff]  ;;  %419 = vperm.xlu0 %882, %v361_v23   ;;  %v362_v42 = vmul.f32 0.00390625, %v354_v41 }
  0xbc   : > { %343 = vst.msk [vmem:[#allocation3 + $0x38] sm:$0xff] %vm214_vm0, %v335_v26  ;;  %485 = vperm.xlu1 %884, %v368_v28   ;;  %394 = vperm.xlu2 %883, %v356_v27   ;;  %v369_v35 = vld [vmem:[#allocation3 + $0x30] sm:$0xff] }
  0xc3   : > { %v370_v32 = vld [vmem:[#allocation3 + $0x38] sm:$0xff] }
  0xc4   : > { %495 = vperm.xlu0 %882, %v370_v32   ;;  %414 = vperm.xlu2 %883, %v360_v31  }
  0xc5   : > { %389 = vperm.xlu1 %884, %v355_v33  }
  0xcc   : > { %490 = vperm.xlu2 %883, %v369_v35  }
  0xcd   : > { %399 = vperm.xlu1 %884, %v357_v36  }
  0xd5   : > { %404 = vperm.xlu1 %884, %v358_v38  }
  0xdd   : > { %409 = vperm.xlu1 %884, %v359_v40  }
  0xe5   : > { %424 = vperm.xlu1 %884, %v362_v42  }
  0xf7   : > { %v466_v43 = vpop.permute.xlu2 %465 }
  0xf8   : > { %v499_v52 = vmul.f32 %v466_v43, %v372_v49 }
  0xfa   : > { %v507_v56 = vsel %vm435_vm1, %v499_v52, 0.0 }
 0x106   : > { %v471_v44 = vpop.permute.xlu2 %470 }
 0x107   : > { %v500_v60 = vmul.f32 %v471_v44, %v373_v54 }
 0x109   : > { %v509_v1 = vsel %vm435_vm1, %v500_v60, 0.0 }
 0x10e   : > { %v476_v45 = vpop.permute.xlu2 %475 }
 0x10f   : > { %v501_v0 = vmul.f32 %v476_v45, %v374_v58 }
 0x111   : > { %v511_v6 = vsel %vm435_vm1, %v501_v0, 0.0  ;;  %v380_v0 = vld [vmem:[%s1320_s2 + $0x8] sm:$0xff] }
 0x115   : > { %v461_v46 = vpop.permute.xlu0 %460 }
 0x116   : > { %v395_v51 = vpop.permute.xlu2 %394  ;;  %v498_v53 = vmul.f32 %v461_v46, %v371_v50 }
 0x117   : > { %v428_v21 = vmul.f32 %v395_v51, %v372_v49 }
 0x118   : > { %v506_v57 = vsel %vm435_vm1, %v498_v53, 0.0 }
 0x119   : > { %v508_v61 = vadd.f32 %v507_v56, %v506_v57  ;;  %v437_v28 = vsel %vm435_vm1, %v428_v21, 0.0 }
 0x11b   : > { %v510_v3 = vadd.f32 %v509_v1, %v508_v61  ;;  %v379_v1 = vld [vmem:[%s1320_s2] sm:$0xff] }
 0x11d   : > { %v512_v9 = vadd.f32 %v511_v6, %v510_v3 }
 0x11e   : > { %v415_v62 = vpop.permute.xlu2 %414 }
 0x11f   : > { %v432_v35 = vmul.f32 %v415_v62, %v376_v4 }
 0x121   : > { %v445_v41 = vsel %vm435_vm1, %v432_v35, 0.0 }
 0x125   : > { %v481_v48 = vpop.permute.xlu0 %480 }
 0x126   : > { %v502_v2 = vmul.f32 %v481_v48, %v375_v63  ;;  %v491_v11 = vpop.permute.xlu2 %490 }
 0x127   : > { %v504_v16 = vmul.f32 %v491_v11, %v377_v10  ;;  %v382_v11 = vld [vmem:[%s1320_s2 + $0x18] sm:$0xff] }
 0x128   : > { %v513_v8 = vsel %vm435_vm1, %v502_v2, 0.0 }
 0x129   : > { %v514_v15 = vadd.f32 %v513_v8, %v512_v9  ;;  %v517_v23 = vsel %vm435_vm1, %v504_v16, 0.0  ;;  %v385_v9 = vld [vmem:[%s1320_s2 + $0x30] sm:$0xff] }
 0x12d   : > { %v420_v59 = vpop.permute.xlu0 %419 }
 0x12e   : > { %v486_v47 = vpop.permute.xlu1 %485  ;;  %v433_v42 = vmul.f32 %v420_v59, %v377_v10  ;;  %v383_v10 = vld [vmem:[%s1320_s2 + $0x20] sm:$0xff] }
 0x12f   : > { %v503_v7 = vmul.f32 %v486_v47, %v376_v4 }
 0x130   : > { %v447_v46 = vsel %vm435_vm1, %v433_v42, 0.0 }
 0x131   : > { %v515_v14 = vsel %vm435_vm1, %v503_v7, 0.0 }
 0x132   : > { %v516_v19 = vadd.f32 %v515_v14, %v514_v15 }
 0x134   : > { %v518_v27 = vadd.f32 %v517_v23, %v516_v19  ;;  %v384_v19 = vld [vmem:[%s1320_s2 + $0x28] sm:$0xff] }
 0x136   : > { %v496_v13 = vpop.permute.xlu0 %495 }
 0x137   : > { %v390_v55 = vpop.permute.xlu1 %389  ;;  %v505_v17 = vmul.f32 %v496_v13, %v378_v12 }
 0x138   : > { %v427_v18 = vmul.f32 %v390_v55, %v371_v50 }
 0x139   : > { %v519_v24 = vsel %vm435_vm1, %v505_v17, 0.0 }
 0x13a   : > { %v436_v25 = vsel %vm435_vm1, %v427_v18, 0.0  ;;  %v520_v30 = vadd.f32 %v519_v24, %v518_v27  ;;  %v386_v18 = vld [vmem:[%s1320_s2 + $0x38] sm:$0xff] }
 0x13b   : > { %v438_v31 = vadd.f32 %v437_v28, %v436_v25 }
 0x13c   : > { %v521_v37 = vrot.slane %v520_v30, 4 }
 0x13e   : > { %v522_v43 = vadd.f32 %v521_v37, %v520_v30 }
 0x13f   : > { %v400_v5 = vpop.permute.xlu1 %399 }
 0x140   : > { %v429_v22 = vmul.f32 %v400_v5, %v373_v54  ;;  %v523_v48 = vrot.slane %v522_v43, 2 }
 0x142   : > { %v439_v29 = vsel %vm435_vm1, %v429_v22, 0.0  ;;  %v524_v52 = vadd.f32 %v523_v48, %v522_v43 }
 0x143   : > { %v440_v33 = vadd.f32 %v439_v29, %v438_v31 }
 0x144   : > { %v525_v55 = vrot.slane %v524_v52, 1 }
 0x147   : > { %v405_v20 = vpop.permute.xlu1 %404 }
 0x148   : > { %v430_v26 = vmul.f32 %v405_v20, %v374_v58  ;;  %v526_v58 = vadd.f32 %v525_v55, %v524_v52 }
 0x14a   : > { %v441_v32 = vsel %vm435_vm1, %v430_v26, 0.0  ;;  %v527_v61 = vmax.f32 %v526_v58, 0.0 }
 0x14b   : > { %v442_v38 = vadd.f32 %v441_v32, %v440_v33 }
 0x14f   : > { %v410_v34 = vpop.permute.xlu1 %409 }
 0x150   : > { %v431_v36 = vmul.f32 %v410_v34, %v375_v63  ;;  %v381_v63 = vld [vmem:[%s1320_s2 + $0x10] sm:$0xff] }
 0x152   : > { %v443_v39 = vsel %vm435_vm1, %v431_v36, 0.0 }
 0x153   : > { %v444_v40 = vadd.f32 %v443_v39, %v442_v38 }
 0x155   : > { %v446_v44 = vadd.f32 %v445_v41, %v444_v40 }
 0x157   : > { %v425_v45 = vpop.permute.xlu1 %424  ;;  %v448_v49 = vadd.f32 %v447_v46, %v446_v44 }
 0x158   : > { %v434_v47 = vmul.f32 %v425_v45, %v378_v12 }
 0x15a   : > { %v449_v50 = vsel %vm435_vm1, %v434_v47, 0.0 }
 0x15b   : > { %v450_v51 = vadd.f32 %v449_v50, %v448_v49 }
 0x15d   : > { %v451_v53 = vrot.slane %v450_v51, 4 }
 0x15f   : > { %v452_v54 = vadd.f32 %v451_v53, %v450_v51 }
 0x161   : > { %v453_v56 = vrot.slane %v452_v54, 2 }
 0x163   : > { %v454_v57 = vadd.f32 %v453_v56, %v452_v54 }
 0x165   : > { %v455_v60 = vrot.slane %v454_v57, 1 }
 0x167   : > { %v456_v59 = vadd.f32 %v455_v60, %v454_v57 }
 0x169   : > { %v457_v62 = vmax.f32 %v456_v59, 0.0 }
 0x16b   : > { %v528_v2 = vadd.f32 %v527_v61, %v457_v62 }
 0x16d   : > { %v531_v3 = vmul.f32 %v528_v2, %v381_v63  ;;  %v530_v4 = vmul.f32 %v528_v2, %v380_v0  ;;  %v529_v5 = vmul.f32 %v528_v2, %v379_v1  ;;  %v535_v12 = vmul.f32 %v528_v2, %v385_v9 }
 0x16e   : > { %v533_v13 = vmul.f32 %v528_v2, %v383_v10  ;;  %v532_v14 = vmul.f32 %v528_v2, %v382_v11  ;;  %v536_v20 = vmul.f32 %v528_v2, %v386_v18  ;;  %v534_v21 = vmul.f32 %v528_v2, %v384_v19 }
 0x16f   : > { %v543_v6 = vsel %vm435_vm1, %v531_v3, 0.0  ;;  %v540_v7 = vsel %vm435_vm1, %v530_v4, 0.0  ;;  %v537_v8 = vsel %vm435_vm1, %v529_v5, 0.0  ;;  %v555_v15 = vsel %vm435_vm1, %v535_v12, 0.0 }
 0x170   : > { %544 = vadd.xlane.f32.xlu0 %v543_v6  ;;  %541 = vadd.xlane.f32.xlu1 %v540_v7  ;;  %v549_v16 = vsel %vm435_vm1, %v533_v13, 0.0  ;;  %v546_v17 = vsel %vm435_vm1, %v532_v14, 0.0  ;;  %v558_v22 = vsel %vm435_vm1, %v536_v20, 0.0  ;;  %v552_v23 = vsel %vm435_vm1, %v534_v21, 0.0 }
 0x171   : > { %538 = vadd.xlane.f32.xlu2 %v537_v8 }
 0x178   : > { %556 = vadd.xlane.f32.xlu0 %v555_v15  ;;  %550 = vadd.xlane.f32.xlu1 %v549_v16 }
 0x179   : > { %547 = vadd.xlane.f32.xlu2 %v546_v17 }
 0x180   : > { %559 = vadd.xlane.f32.xlu1 %v558_v22 }
 0x181   : > { %553 = vadd.xlane.f32.xlu2 %v552_v23 }
 0x1e3   : > { %v545_v24 = vpop.xlane.xlu0 %544  ;;  %v542_v25 = vpop.xlane.xlu1 %541 }
 0x1e4   : > { %v812_v26 = vmul.f32 -1.442695, %v545_v24  ;;  %v811_v27 = vmul.f32 -1.442695, %v542_v25  ;;  %v539_v28 = vpop.xlane.xlu2 %538 }
 0x1e5   : > { %v810_v29 = vmul.f32 -1.442695, %v539_v28 }
 0x1e6   : > { %885 = vpow2.f32 %v812_v26 }
 0x1e7   : > { %887 = vpow2.f32 %v811_v27 }
 0x1e8   : > { %889 = vpow2.f32 %v810_v29 }
 0x1eb   : > { %v557_v30 = vpop.xlane.xlu0 %556  ;;  %v551_v31 = vpop.xlane.xlu1 %550 }
 0x1ec   : > { %v886_v32 = vpop.eup %885  ;;  %v816_v33 = vmul.f32 -1.442695, %v557_v30  ;;  %v548_v34 = vpop.xlane.xlu2 %547  ;;  %v814_v37 = vmul.f32 -1.442695, %v551_v31 }
 0x1ed   : > { %v888_v35 = vpop.eup %887  ;;  %v587_v36 = vadd.f32 1.0, %v886_v32  ;;  %v813_v40 = vmul.f32 -1.442695, %v548_v34 }
 0x1ee   : > { %v890_v38 = vpop.eup %889  ;;  %v586_v39 = vadd.f32 1.0, %v888_v35  ;;  %891 = vpow2.f32 %v816_v33 }
 0x1ef   : > { %893 = vrcp.f32 %v587_v36  ;;  %v1211_v41 = vadd.f32 1.0, %v890_v38  ;;  %vm628_vm2 = vweird.f32 %v587_v36  ;;  %v632_v51 = vand.u32 2147483647, %v587_v36 }
 0x1f0   : > { %895 = vrcp.f32 %v586_v39  ;;  %v634_v53 = vand.u32 2147483648, %v587_v36  ;;  %vm613_vm3 = vweird.f32 %v586_v39  ;;  %v617_v57 = vand.u32 2147483647, %v586_v39 }
 0x1f1   : > { %897 = vpow2.f32 %v814_v37  ;;  %v619_v61 = vand.u32 2147483648, %v586_v39  ;;  %vm1226_vm5 = vcmp.eq.f32.partialorder %v632_v51, 8.507059e+37  ;;  %v602_v3 = vand.u32 2147483647, %v1211_v41 }
 0x1f2   : > { %899 = vpow2.f32 %v813_v40  ;;  %v635_v5 = vor.u32 1.1754944e-38, %v634_v53  ;;  %vm1233_vm7 = vcmp.eq.f32.partialorder %v617_v57, 8.507059e+37  ;;  %v604_v11 = vand.u32 2147483648, %v1211_v41 }
 0x1f3   : > { %901 = vrcp.f32 %v1211_v41  ;;  %v560_v42 = vpop.xlane.xlu1 %559  ;;  %v620_v10 = vor.u32 1.1754944e-38, %v619_v61  ;;  %vm598_vm11 = vweird.f32 %v1211_v41  ;;  %vm1251_vm12 = vcmp.eq.f32.partialorder %v602_v3, 8.507059e+37 }
 0x1f4   : > { %v892_v43 = vpop.eup %891  ;;  %v817_v44 = vmul.f32 -1.442695, %v560_v42  ;;  %v554_v45 = vpop.xlane.xlu2 %553  ;;  %v605_v25 = vor.u32 1.1754944e-38, %v604_v11 }
 0x1f5   : > { %v894_v46 = vpop.eup %893  ;;  %v1215_v47 = vadd.f32 1.0, %v892_v43  ;;  %v815_v48 = vmul.f32 -1.442695, %v554_v45 }
 0x1f6   : > { %v896_v49 = vpop.eup %895  ;;  %v624_v50 = vmul.f32 %v894_v46, %v587_v36  ;;  %vm629_vm4 = vweird.f32 %v894_v46 }
 0x1f7   : > { %v898_v52 = vpop.eup %897  ;;  %v609_v54 = vmul.f32 %v896_v49, %v586_v39  ;;  %903 = vrcp.f32 %v1215_v47  ;;  %vm614_vm6 = vweird.f32 %v896_v49  ;;  %vm630_vm8 = vmor %vm628_vm2, %vm629_vm4  ;;  %v692_v23 = vand.u32 2147483647, %v1215_v47 }
 0x1f8   : > { %v900_v55 = vpop.eup %899  ;;  %v625_v56 = vsub.f32 1.0, %v624_v50  ;;  %v1221_v58 = vadd.f32 1.0, %v898_v52  ;;  %905 = vpow2.f32 %v817_v44  ;;  %vm615_vm9 = vmor %vm613_vm3, %vm614_vm6  ;;  %v694_v26 = vand.u32 2147483648, %v1215_v47 }
 0x1f9   : > { %v902_v60 = vpop.eup %901  ;;  %v610_v59 = vsub.f32 1.0, %v609_v54  ;;  %v1223_v62 = vadd.f32 1.0, %v900_v55  ;;  %907 = vpow2.f32 %v815_v48  ;;  %vm688_vm15 = vweird.f32 %v1215_v47 }
 0x1fa   : > { %v626_v63 = vmul.f32 %v894_v46, %v625_v56  ;;  %v594_v1 = vmul.f32 %v902_v60, %v1211_v41  ;;  %909 = vrcp.f32 %v1221_v58  ;;  %vm599_vm10 = vweird.f32 %v902_v60 }
 0x1fb   : > { %v611_v2 = vmul.f32 %v896_v49, %v610_v59  ;;  %911 = vrcp.f32 %v1223_v62  ;;  %vm600_vm13 = vmor %vm598_vm11, %vm599_vm10  ;;  %vm693_vm1 = vcmp.eq.f32.partialorder %v692_v23, 8.507059e+37  ;;  %v695_v37 = vor.u32 1.1754944e-38, %v694_v26 }
 0x1fc   : > { %v627_v4 = vadd.f32 %v894_v46, %v626_v63  ;;  %v595_v7 = vsub.f32 1.0, %v594_v1  ;;  %v662_v38 = vand.u32 2147483647, %v1221_v58  ;;  %v664_v39 = vand.u32 2147483648, %v1221_v58 }
 0x1fd   : > { %v904_v8 = vpop.eup %903  ;;  %v612_v9 = vadd.f32 %v896_v49, %v611_v2  ;;  %vm658_vm4 = vweird.f32 %v1221_v58  ;;  %v649_v44 = vand.u32 2147483648, %v1223_v62 }
 0x1fe   : > { %v906_v12 = vpop.eup %905  ;;  %v631_v13 = vsel %vm630_vm8, %v894_v46, %v627_v4  ;;  %v596_v14 = vmul.f32 %v902_v60, %v595_v7  ;;  %v684_v15 = vmul.f32 %v904_v8, %v1215_v47  ;;  %vm689_vm14 = vweird.f32 %v904_v8 }
 0x1ff   : > { %v908_v16 = vpop.eup %907  ;;  %v636_v17 = vsel %vm1226_vm5, %v635_v5, %v631_v13  ;;  %v616_v18 = vsel %vm615_vm9, %v896_v49, %v612_v9  ;;  %v1263_v27 = vadd.f32 1.0, %v906_v12  ;;  %vm690_vm2 = vmor %vm688_vm15, %vm689_vm14  ;;  %v647_v47 = vand.u32 2147483647, %v1223_v62 }
 0x200   : > { %715 = vst.msk [vmem:[%s1240_s8 + $0x10] sm:$0xff] %vm214_vm0, %v636_v17  ;;  %v621_v20 = vsel %vm1233_vm7, %v620_v10, %v616_v18  ;;  %v597_v21 = vadd.f32 %v902_v60, %v596_v14  ;;  %v685_v22 = vsub.f32 1.0, %v684_v15  ;;  %v910_v24 = vpop.eup %909  ;;  %v1265_v28 = vadd.f32 1.0, %v908_v16 }
 0x201   : > { %714 = vst.msk [vmem:[%s1240_s8 + $0x8] sm:$0xff] %vm214_vm0, %v621_v20  ;;  %v654_v31 = vmul.f32 %v910_v24, %v1221_v58  ;;  %v912_v32 = vpop.eup %911  ;;  %913 = vrcp.f32 %v1263_v27  ;;  %vm659_vm3 = vweird.f32 %v910_v24  ;;  %v665_v49 = vor.u32 1.1754944e-38, %v664_v39 }
 0x202   : > { %v601_v29 = vsel %vm600_vm13, %v902_v60, %v597_v21  ;;  %v686_v30 = vmul.f32 %v904_v8, %v685_v22  ;;  %v639_v36 = vmul.f32 %v912_v32, %v1223_v62  ;;  %915 = vrcp.f32 %v1265_v28  ;;  %vm660_vm6 = vmor %vm658_vm4, %vm659_vm3 }
 0x203   : > { %v606_v33 = vsel %vm1251_vm12, %v605_v25, %v601_v29  ;;  %v655_v35 = vsub.f32 1.0, %v654_v31  ;;  %vm644_vm5 = vweird.f32 %v912_v32  ;;  %vm643_vm7 = vweird.f32 %v1223_v62 }
 0x204   : > { %713 = vst.msk [vmem:[%s1240_s8] sm:$0xff] %vm214_vm0, %v606_v33  ;;  %v687_v34 = vadd.f32 %v904_v8, %v686_v30  ;;  %v640_v42 = vsub.f32 1.0, %v639_v36  ;;  %vm663_vm8 = vcmp.eq.f32.partialorder %v662_v38, 8.507059e+37  ;;  %vm645_vm9 = vmor %vm643_vm7, %vm644_vm5  ;;  %v650_v55 = vor.u32 1.1754944e-38, %v649_v44 }
 0x205   : > { %v656_v41 = vmul.f32 %v910_v24, %v655_v35  ;;  %vm648_vm10 = vcmp.eq.f32.partialorder %v647_v47, 8.507059e+37  ;;  %v709_v59 = vand.u32 2147483648, %v1263_v27  ;;  %v707_v62 = vand.u32 2147483647, %v1263_v27 }
 0x206   : > { %v691_v40 = vsel %vm690_vm2, %v904_v8, %v687_v34  ;;  %v641_v46 = vmul.f32 %v912_v32, %v640_v42  ;;  %vm703_vm12 = vweird.f32 %v1263_v27  ;;  %v679_v0 = vand.u32 2147483648, %v1265_v28 }
 0x207   : > { %v696_v43 = vsel %vm693_vm1, %v695_v37, %v691_v40  ;;  %v657_v45 = vadd.f32 %v910_v24, %v656_v41  ;;  %v914_v48 = vpop.eup %913  ;;  %v677_v3 = vand.u32 2147483647, %v1265_v28  ;;  %v710_v4 = vor.u32 1.1754944e-38, %v709_v59 }
 0x208   : > { %719 = vst.msk [vmem:[%s1240_s8 + $0x30] sm:$0xff] %vm214_vm0, %v696_v43  ;;  %v642_v51 = vadd.f32 %v912_v32, %v641_v46  ;;  %v699_v52 = vmul.f32 %v914_v48, %v1263_v27  ;;  %v916_v53 = vpop.eup %915  ;;  %vm704_vm11 = vweird.f32 %v914_v48  ;;  %vm708_vm15 = vcmp.eq.f32.partialorder %v707_v62, 8.507059e+37 }
 0x209   : > { %v661_v50 = vsel %vm660_vm6, %v910_v24, %v657_v45  ;;  %v669_v58 = vmul.f32 %v916_v53, %v1265_v28  ;;  %vm674_vm13 = vweird.f32 %v916_v53  ;;  %vm705_vm14 = vmor %vm703_vm12, %vm704_vm11  ;;  %vm673_vm1 = vweird.f32 %v1265_v28 }
 0x20a   : > { %v666_v54 = vsel %vm663_vm8, %v665_v49, %v661_v50  ;;  %v646_v56 = vsel %vm645_vm9, %v912_v32, %v642_v51  ;;  %v700_v57 = vsub.f32 1.0, %v699_v52  ;;  %vm675_vm2 = vmor %vm673_vm1, %vm674_vm13  ;;  %v680_v8 = vor.u32 1.1754944e-38, %v679_v0 }
 0x20b   : > { %717 = vst.msk [vmem:[%s1240_s8 + $0x20] sm:$0xff] %vm214_vm0, %v666_v54  ;;  %v651_v60 = vsel %vm648_vm10, %v650_v55, %v646_v56  ;;  %v670_v63 = vsub.f32 1.0, %v669_v58  ;;  %vm678_vm3 = vcmp.eq.f32.partialorder %v677_v3, 8.507059e+37 }
 0x20c   : > { %716 = vst.msk [vmem:[%s1240_s8 + $0x18] sm:$0xff] %vm214_vm0, %v651_v60  ;;  %v701_v61 = vmul.f32 %v914_v48, %v700_v57 }
 0x20d   : > { %v671_v2 = vmul.f32 %v916_v53, %v670_v63 }
 0x20e   : > { %v702_v1 = vadd.f32 %v914_v48, %v701_v61 }
 0x20f   : > { %v672_v6 = vadd.f32 %v916_v53, %v671_v2 }
 0x210   : > { %v706_v5 = vsel %vm705_vm14, %v914_v48, %v702_v1 }
 0x211   : > { %v711_v7 = vsel %vm708_vm15, %v710_v4, %v706_v5  ;;  %v676_v9 = vsel %vm675_vm2, %v916_v53, %v672_v6 }
 0x212   : > { %720 = vst.msk [vmem:[%s1240_s8 + $0x38] sm:$0xff] %vm214_vm0, %v711_v7  ;;  %v681_v10 = vsel %vm678_vm3, %v680_v8, %v676_v9 }
 0x213   : > { %718 = vst.msk [vmem:[%s1240_s8 + $0x28] sm:$0xff] %vm214_vm0, %v681_v10 }
 0x214 PF: > { %s16_s17 = sadd.s32 1, %s997_s17   ;;  %s1330_s12 = smov %s981_s13 }
 0x215   : > { %p13_p0 = scmp.ge.s32.totalorder %s16_s17, 4   ;;  %s1331_s13 = smov %s985_s14 }
 0x216   : > { %s1332_s14 = smov %s1073_s24  ;;  %s1333_s15 = smov %s993_s16 }
 0x217   : > { %s1334_s16 = smov %s1336_s19  ;;  %15 = sbr.rel (!%p13_p0) target bundleno = 4 (0x4), region = 80 }
 0x21c   :  { %742 = vsyncpa [#allocation5], 1 }
 0x21d   :  { %744 = vsyncpa [#allocation5 + $0x1], 1 }

</bundles_post_ra>
